<compile_context>
chip_gen: v5e
topology: v5e:2x2
jax: 0.10.0
libtpu: 0.0.40
codegen_flags: <defaults>
</compile_context>

<pallas_src>
import jax
import jax.numpy as jnp
from jax.experimental import pallas as pl
from jax.experimental.pallas import tpu as pltpu

# Model hyper-parameters (small, consistent with the module's __init__).
EMBED = 32                  # embed_dim
HEADS = 4                   # num_heads
HEAD_DIM = EMBED // HEADS   # 8
D_HID = 64                  # d_hid
SEQ = 8                     # sequence length
BATCH = 2

BS = BATCH * SEQ            # 16 rows for the dense layers
BH = BATCH * HEADS          # 8  batched attention "batch" dim

PACK_LANES = 128            # EMBED + D_HID + EMBED == 128
BIAS_ROW = 64               # row holding [bo | b1 | b2]
MASK_ROW = 72               # rows MASK_ROW : MASK_ROW + B*S hold the additive mask bias
PACK_ROWS = MASK_ROW + BS   # 88 (multiple of 8)
OUT_LANES = 128             # lane-dense output padding


def encoder_layer_kernel(x_ref, w_ref, out_ref):
    x2d = x_ref[...]                                                   # (B*S, E)
    w = w_ref[...]                                                     # (88, 128) packed slab

    # Static slices out of the packed slab (row offsets are multiples of 8).
    wo_t = w[0:EMBED, 0:EMBED]                                         # (E, E)
    w1_t = w[0:EMBED, EMBED:EMBED + D_HID]                             # (E, D_HID)
    w2_t = w[0:D_HID, EMBED + D_HID:EMBED + D_HID + EMBED]             # (D_HID, E)
    w_qkv = w[EMBED:2 * EMBED, 0:3 * EMBED]                            # (E, 3E) block-diag, scale in Q
    bo = w[BIAS_ROW:BIAS_ROW + 1, 0:EMBED]                             # (1, E)
    b1 = w[BIAS_ROW:BIAS_ROW + 1, EMBED:EMBED + D_HID]                 # (1, D_HID)
    b2 = w[BIAS_ROW:BIAS_ROW + 1, EMBED + D_HID:EMBED + D_HID + EMBED] # (1, E)
    mbias = w[MASK_ROW:MASK_ROW + BS, 0:SEQ].reshape(BATCH, SEQ, SEQ)  # (B, S, S) additive

    # --- fused Q/K/V projection for all heads: one (B*S,E)@(E,3E) MXU matmul ---
    qkv = jnp.dot(x2d, w_qkv, preferred_element_type=jnp.float32)      # (B*S, 3E)

    def heads_3d(base):
        # Token-major (B*S, E) slab -> head-major (B*H, S, D), batch-major then head.
        parts = [qkv[:, base + h * HEAD_DIM:base + (h + 1) * HEAD_DIM]
                 .reshape(BATCH, 1, SEQ, HEAD_DIM) for h in range(HEADS)]
        return jnp.concatenate(parts, axis=1).reshape(BH, SEQ, HEAD_DIM)

    q3 = heads_3d(0)                # already scaled by 1/sqrt(E)
    k3 = heads_3d(EMBED)
    v3 = heads_3d(2 * EMBED)

    # --- batched attention over (batch*head), single masked softmax ---
    energy = jnp.einsum('bqd,bkd->bqk', q3, k3,
                        preferred_element_type=jnp.float32)            # (B*H, S, S)
    energy = (energy.reshape(BATCH, HEADS, SEQ, SEQ)
              + mbias[:, None, :, :]).reshape(BH, SEQ, SEQ)            # additive mask bias
    m = jnp.max(energy, axis=-1, keepdims=True)
    e = jnp.exp(energy - m)
    denom = jnp.sum(e, axis=-1, keepdims=True)
    att = e * pl.reciprocal(denom, approx=True)                        # EUP reciprocal
    ctx = jnp.einsum('bqk,bkd->bqd', att, v3,
                     preferred_element_type=jnp.float32)               # (B*H, S, D)

    # --- fc_out: lane-concat heads back to token-major, single K=32 matmul ---
    ctx4 = ctx.reshape(BATCH, HEADS, SEQ, HEAD_DIM)                    # layout-preserving
    ctx_tok = jnp.concatenate(
        [ctx4[:, h].reshape(BS, HEAD_DIM) for h in range(HEADS)], axis=1)   # (B*S, E)
    attn_out = jnp.dot(ctx_tok, wo_t, preferred_element_type=jnp.float32) + bo

    # --- residual 1 ---
    x1 = attn_out + x2d

    # --- feed-forward + residual 2 ---
    h1 = jnp.maximum(jnp.dot(x1, w1_t, preferred_element_type=jnp.float32) + b1, 0.0)
    x2 = jnp.dot(h1, w2_t, preferred_element_type=jnp.float32) + b2
    y = x2 + x1                                                        # (B*S, E)

    # --- lane-dense output: full 128-lane unmasked stores, wrapper slices [:, :E] ---
    out_ref[...] = jnp.concatenate(
        [y, jnp.zeros((BS, OUT_LANES - EMBED), jnp.float32)], axis=1)


def encoder_layer(x, mask, params):
    wq, wk, wv, wo, bo, w1, b1, w2, b2 = params
    N, S, E = x.shape
    assert (N, S, E) == (BATCH, SEQ, EMBED), "kernel is specialized to these sizes"
    scale = 1.0 / jnp.sqrt(jnp.float32(E))

    x2d = x.reshape(N * S, E).astype(jnp.float32)

    # Block-diagonal per-head weights so Q/K/V comes from token-major x2d directly.
    def block_diag(w_t):
        m = jnp.zeros((EMBED, EMBED), jnp.float32)
        for h in range(HEADS):
            m = m.at[h * HEAD_DIM:(h + 1) * HEAD_DIM,
                     h * HEAD_DIM:(h + 1) * HEAD_DIM].set(w_t)
        return m

    w_qkv_bd = jnp.concatenate(
        [block_diag(scale * wq.T), block_diag(wk.T), block_diag(wv.T)], axis=1)  # (E, 3E)

    # Additive mask bias per batch (broadcast over heads in-kernel).
    mbias = jnp.where(mask[:, 0] == 0, jnp.float32(-1e20), jnp.float32(0.0))     # (N, S, S)

    # Pack everything (weights, biases, mask bias) into one 128-lane slab -> 2 input DMAs.
    wpack = jnp.zeros((PACK_ROWS, PACK_LANES), jnp.float32)
    wpack = wpack.at[0:EMBED, 0:EMBED].set(wo.T)
    wpack = wpack.at[0:EMBED, EMBED:EMBED + D_HID].set(w1.T)
    wpack = wpack.at[0:D_HID, EMBED + D_HID:EMBED + D_HID + EMBED].set(w2.T)
    wpack = wpack.at[EMBED:2 * EMBED, 0:3 * EMBED].set(w_qkv_bd)
    wpack = wpack.at[BIAS_ROW, 0:EMBED].set(bo.reshape(-1))
    wpack = wpack.at[BIAS_ROW, EMBED:EMBED + D_HID].set(b1.reshape(-1))
    wpack = wpack.at[BIAS_ROW, EMBED + D_HID:EMBED + D_HID + EMBED].set(b2.reshape(-1))
    wpack = wpack.at[MASK_ROW:MASK_ROW + N * S, 0:S].set(mbias.reshape(N * S, S))

    full2 = lambda i: (0, 0)
    out_padded = pl.pallas_call(
        encoder_layer_kernel,
        out_shape=jax.ShapeDtypeStruct((N * S, OUT_LANES), jnp.float32),
        grid_spec=pltpu.PrefetchScalarGridSpec(
            num_scalar_prefetch=0,
            grid=(1,),                                      # single invocation, batch folded
            in_specs=[
                pl.BlockSpec((N * S, E), full2),            # x2d
                pl.BlockSpec((PACK_ROWS, PACK_LANES), full2),  # packed weights+biases+mask
            ],
            out_specs=pl.BlockSpec((N * S, OUT_LANES), full2),
        ),
        compiler_params=pltpu.CompilerParams(dimension_semantics=("arbitrary",)),
    )(x2d, wpack)
    return out_padded[:, :E].reshape(N, S, E)


def ref_forward(x, mask, params):
    """Pure-JAX reference mirroring the PyTorch forward exactly."""
    wq, wk, wv, wo, bo, w1, b1, w2, b2 = params
    N, S, E = x.shape
    xh = x.reshape(N, S, HEADS, HEAD_DIM)
    q = xh @ wq.T
    k = xh @ wk.T
    v = xh @ wv.T
    energy = jnp.einsum('nqhd,nkhd->nhqk', q, k)
    energy = jnp.where(mask == 0, -1e20, energy)
    att = jax.nn.softmax(energy / jnp.sqrt(jnp.float32(E)), axis=3)
    out = jnp.einsum('nhql,nlhd->nqhd', att, v).reshape(N, S, E)
    out = out @ wo.T + bo
    x1 = out + x
    h1 = jax.nn.relu(x1 @ w1.T + b1)
    x2 = h1 @ w2.T + b2
    return x2 + x1


def make_params(key):
    ks = jax.random.split(key, 9)
    s = 0.1
    wq = s * jax.random.normal(ks[0], (HEAD_DIM, HEAD_DIM), jnp.float32)
    wk = s * jax.random.normal(ks[1], (HEAD_DIM, HEAD_DIM), jnp.float32)
    wv = s * jax.random.normal(ks[2], (HEAD_DIM, HEAD_DIM), jnp.float32)
    wo = s * jax.random.normal(ks[3], (EMBED, EMBED), jnp.float32)
    bo = s * jax.random.normal(ks[4], (1, EMBED), jnp.float32)
    w1 = s * jax.random.normal(ks[5], (D_HID, EMBED), jnp.float32)
    b1 = s * jax.random.normal(ks[6], (1, D_HID), jnp.float32)
    w2 = s * jax.random.normal(ks[7], (EMBED, D_HID), jnp.float32)
    b2 = s * jax.random.normal(ks[8], (1, EMBED), jnp.float32)
    return (wq, wk, wv, wo, bo, w1, b1, w2, b2)


if __name__ == "__main__":
    key = jax.random.PRNGKey(0)
    kx, kp = jax.random.split(key)
    x = jax.random.normal(kx, (BATCH, SEQ, EMBED), jnp.float32)
    # Causal mask (0 == masked), broadcast over heads like the PyTorch module.
    mask = jnp.tril(jnp.ones((SEQ, SEQ), jnp.float32))[None, None, :, :]
    mask = jnp.broadcast_to(mask, (BATCH, 1, SEQ, SEQ))
    params = make_params(kp)

    out = encoder_layer(x, mask, params)
    out = jax.block_until_ready(out)

    ref = ref_forward(x, mask, params)
    # Slightly looser tolerance than pure-f32 because of the approx (EUP) reciprocal
    # in the softmax denominator.
    assert jnp.allclose(out, ref, atol=2e-3, rtol=2e-3), "mismatch vs. JAX reference"
    print("KERNEL_OK")
</pallas_src>

<mosaic_0001>
module attributes {stable_mosaic.version = 11 : i64} {
  func.func @encoder_layer_kernel(%arg0: i32, %arg1: memref<16x32xf32, #tpu.memory_space<vmem>>, %arg2: memref<88x128xf32, #tpu.memory_space<vmem>>, %arg3: memref<16x128xf32, #tpu.memory_space<vmem>>) attributes {dimension_semantics = [#tpu.dimension_semantics<arbitrary>], iteration_bounds = array<i64: 1>, scalar_prefetch = 0 : i64, scratch_operands = 0 : i64, tpu.core_type = #tpu.core_type<tc>, window_params = [{pipeline_mode = #tpu.pipeline_mode<synchronous>, transform_indices = @transform_0, window_bounds = array<i64: 16, 32>}, {pipeline_mode = #tpu.pipeline_mode<synchronous>, transform_indices = @transform_1, window_bounds = array<i64: 88, 128>}, {pipeline_mode = #tpu.pipeline_mode<synchronous>, transform_indices = @transform_2, window_bounds = array<i64: 16, 128>}]} {
    %c0 = arith.constant 0 : index
    %c0_0 = arith.constant 0 : index
    %0 = vector.load %arg1[%c0, %c0_0] : memref<16x32xf32, #tpu.memory_space<vmem>>, vector<16x32xf32>
    %c0_1 = arith.constant 0 : index
    %c0_2 = arith.constant 0 : index
    %1 = vector.load %arg2[%c0_1, %c0_2] : memref<88x128xf32, #tpu.memory_space<vmem>>, vector<88x128xf32>
    %2 = vector.extract_strided_slice %1 {offsets = [0, 0], sizes = [32, 32], strides = [1, 1]} : vector<88x128xf32> to vector<32x32xf32>
    %3 = vector.extract_strided_slice %1 {offsets = [0, 32], sizes = [32, 64], strides = [1, 1]} : vector<88x128xf32> to vector<32x64xf32>
    %4 = vector.extract_strided_slice %1 {offsets = [0, 96], sizes = [64, 32], strides = [1, 1]} : vector<88x128xf32> to vector<64x32xf32>
    %5 = vector.extract_strided_slice %1 {offsets = [32, 0], sizes = [32, 96], strides = [1, 1]} : vector<88x128xf32> to vector<32x96xf32>
    %6 = vector.extract_strided_slice %1 {offsets = [64, 0], sizes = [1, 32], strides = [1, 1]} : vector<88x128xf32> to vector<1x32xf32>
    %7 = vector.extract_strided_slice %1 {offsets = [64, 32], sizes = [1, 64], strides = [1, 1]} : vector<88x128xf32> to vector<1x64xf32>
    %8 = vector.extract_strided_slice %1 {offsets = [64, 96], sizes = [1, 32], strides = [1, 1]} : vector<88x128xf32> to vector<1x32xf32>
    %9 = vector.extract_strided_slice %1 {offsets = [72, 0], sizes = [16, 8], strides = [1, 1]} : vector<88x128xf32> to vector<16x8xf32>
    %10 = vector.shape_cast %9 : vector<16x8xf32> to vector<2x8x8xf32>
    %cst = arith.constant dense<0.000000e+00> : vector<16x96xf32>
    %11 = tpu.matmul %0, %5, %cst {dimension_numbers = #tpu.dot_dimension_numbers<[1], [0], [0], [1], [0, 0, 1, 1], [], []>} : vector<16x32xf32>, vector<32x96xf32>, vector<16x96xf32> -> vector<16x96xf32>
    %12 = vector.extract_strided_slice %11 {offsets = [0, 0], sizes = [16, 8], strides = [1, 1]} : vector<16x96xf32> to vector<16x8xf32>
    %13 = vector.shape_cast %12 : vector<16x8xf32> to vector<2x1x8x8xf32>
    %14 = vector.extract_strided_slice %11 {offsets = [0, 8], sizes = [16, 8], strides = [1, 1]} : vector<16x96xf32> to vector<16x8xf32>
    %15 = vector.shape_cast %14 : vector<16x8xf32> to vector<2x1x8x8xf32>
    %16 = vector.extract_strided_slice %11 {offsets = [0, 16], sizes = [16, 8], strides = [1, 1]} : vector<16x96xf32> to vector<16x8xf32>
    %17 = vector.shape_cast %16 : vector<16x8xf32> to vector<2x1x8x8xf32>
    %18 = vector.extract_strided_slice %11 {offsets = [0, 24], sizes = [16, 8], strides = [1, 1]} : vector<16x96xf32> to vector<16x8xf32>
    %19 = vector.shape_cast %18 : vector<16x8xf32> to vector<2x1x8x8xf32>
    %20 = tpu.concatenate %13, %15, %17, %19 in 1 : vector<2x1x8x8xf32>, vector<2x1x8x8xf32>, vector<2x1x8x8xf32>, vector<2x1x8x8xf32> -> vector<2x4x8x8xf32>
    %21 = vector.shape_cast %20 : vector<2x4x8x8xf32> to vector<8x8x8xf32>
    %22 = vector.extract_strided_slice %11 {offsets = [0, 32], sizes = [16, 8], strides = [1, 1]} : vector<16x96xf32> to vector<16x8xf32>
    %23 = vector.shape_cast %22 : vector<16x8xf32> to vector<2x1x8x8xf32>
    %24 = vector.extract_strided_slice %11 {offsets = [0, 40], sizes = [16, 8], strides = [1, 1]} : vector<16x96xf32> to vector<16x8xf32>
    %25 = vector.shape_cast %24 : vector<16x8xf32> to vector<2x1x8x8xf32>
    %26 = vector.extract_strided_slice %11 {offsets = [0, 48], sizes = [16, 8], strides = [1, 1]} : vector<16x96xf32> to vector<16x8xf32>
    %27 = vector.shape_cast %26 : vector<16x8xf32> to vector<2x1x8x8xf32>
    %28 = vector.extract_strided_slice %11 {offsets = [0, 56], sizes = [16, 8], strides = [1, 1]} : vector<16x96xf32> to vector<16x8xf32>
    %29 = vector.shape_cast %28 : vector<16x8xf32> to vector<2x1x8x8xf32>
    %30 = tpu.concatenate %23, %25, %27, %29 in 1 : vector<2x1x8x8xf32>, vector<2x1x8x8xf32>, vector<2x1x8x8xf32>, vector<2x1x8x8xf32> -> vector<2x4x8x8xf32>
    %31 = vector.shape_cast %30 : vector<2x4x8x8xf32> to vector<8x8x8xf32>
    %32 = vector.extract_strided_slice %11 {offsets = [0, 64], sizes = [16, 8], strides = [1, 1]} : vector<16x96xf32> to vector<16x8xf32>
    %33 = vector.shape_cast %32 : vector<16x8xf32> to vector<2x1x8x8xf32>
    %34 = vector.extract_strided_slice %11 {offsets = [0, 72], sizes = [16, 8], strides = [1, 1]} : vector<16x96xf32> to vector<16x8xf32>
    %35 = vector.shape_cast %34 : vector<16x8xf32> to vector<2x1x8x8xf32>
    %36 = vector.extract_strided_slice %11 {offsets = [0, 80], sizes = [16, 8], strides = [1, 1]} : vector<16x96xf32> to vector<16x8xf32>
    %37 = vector.shape_cast %36 : vector<16x8xf32> to vector<2x1x8x8xf32>
    %38 = vector.extract_strided_slice %11 {offsets = [0, 88], sizes = [16, 8], strides = [1, 1]} : vector<16x96xf32> to vector<16x8xf32>
    %39 = vector.shape_cast %38 : vector<16x8xf32> to vector<2x1x8x8xf32>
    %40 = tpu.concatenate %33, %35, %37, %39 in 1 : vector<2x1x8x8xf32>, vector<2x1x8x8xf32>, vector<2x1x8x8xf32>, vector<2x1x8x8xf32> -> vector<2x4x8x8xf32>
    %41 = vector.shape_cast %40 : vector<2x4x8x8xf32> to vector<8x8x8xf32>
    "tpu.trace_start"() <{level = 10 : i32, message = "bqd,bkd->bqk"}> : () -> ()
    %cst_3 = arith.constant dense<0.000000e+00> : vector<8x8x8xf32>
    %42 = tpu.matmul %21, %31, %cst_3 {dimension_numbers = #tpu.dot_dimension_numbers<[2], [2], [1], [1], [0, 0, 0, 1, 1, 1], [0], [0]>} : vector<8x8x8xf32>, vector<8x8x8xf32>, vector<8x8x8xf32> -> vector<8x8x8xf32>
    "tpu.trace_stop"() : () -> ()
    %43 = vector.shape_cast %42 : vector<8x8x8xf32> to vector<2x4x8x8xf32>
    %44 = vector.shape_cast %10 : vector<2x8x8xf32> to vector<2x1x8x8xf32>
    %45 = vector.broadcast %44 : vector<2x1x8x8xf32> to vector<2x4x8x8xf32>
    %46 = arith.addf %43, %45 : vector<2x4x8x8xf32>
    %47 = vector.shape_cast %46 : vector<2x4x8x8xf32> to vector<8x8x8xf32>
    %cst_4 = arith.constant dense<0xFF800000> : vector<8x8xf32>
    %48 = vector.multi_reduction <maximumf>, %47, %cst_4 [2] : vector<8x8x8xf32> to vector<8x8xf32>
    %49 = vector.shape_cast %48 : vector<8x8xf32> to vector<8x8x1xf32>
    %50 = vector.broadcast %49 : vector<8x8x1xf32> to vector<8x8x8xf32>
    %51 = arith.subf %47, %50 : vector<8x8x8xf32>
    %52 = math.exp %51 : vector<8x8x8xf32>
    %cst_5 = arith.constant dense<0.000000e+00> : vector<8x8xf32>
    %53 = vector.multi_reduction <add>, %52, %cst_5 [2] : vector<8x8x8xf32> to vector<8x8xf32>
    %54 = vector.shape_cast %53 : vector<8x8xf32> to vector<8x8x1xf32>
    %55 = tpu.reciprocal %54 {approx = true} : vector<8x8x1xf32> -> vector<8x8x1xf32>
    %56 = vector.broadcast %55 : vector<8x8x1xf32> to vector<8x8x8xf32>
    %57 = arith.mulf %52, %56 : vector<8x8x8xf32>
    "tpu.trace_start"() <{level = 10 : i32, message = "bqk,bkd->bqd"}> : () -> ()
    %cst_6 = arith.constant dense<0.000000e+00> : vector<8x8x8xf32>
    %58 = tpu.matmul %57, %41, %cst_6 {dimension_numbers = #tpu.dot_dimension_numbers<[2], [1], [1], [2], [0, 0, 0, 1, 1, 2], [0], [0]>} : vector<8x8x8xf32>, vector<8x8x8xf32>, vector<8x8x8xf32> -> vector<8x8x8xf32>
    "tpu.trace_stop"() : () -> ()
    %59 = vector.shape_cast %58 : vector<8x8x8xf32> to vector<2x4x8x8xf32>
    %60 = vector.extract_strided_slice %59 {offsets = [0, 0, 0, 0], sizes = [2, 1, 8, 8], strides = [1, 1, 1, 1]} : vector<2x4x8x8xf32> to vector<2x1x8x8xf32>
    %61 = vector.shape_cast %60 : vector<2x1x8x8xf32> to vector<2x8x8xf32>
    %62 = vector.shape_cast %61 : vector<2x8x8xf32> to vector<16x8xf32>
    %63 = vector.extract_strided_slice %59 {offsets = [0, 1, 0, 0], sizes = [2, 1, 8, 8], strides = [1, 1, 1, 1]} : vector<2x4x8x8xf32> to vector<2x1x8x8xf32>
    %64 = vector.shape_cast %63 : vector<2x1x8x8xf32> to vector<2x8x8xf32>
    %65 = vector.shape_cast %64 : vector<2x8x8xf32> to vector<16x8xf32>
    %66 = vector.extract_strided_slice %59 {offsets = [0, 2, 0, 0], sizes = [2, 1, 8, 8], strides = [1, 1, 1, 1]} : vector<2x4x8x8xf32> to vector<2x1x8x8xf32>
    %67 = vector.shape_cast %66 : vector<2x1x8x8xf32> to vector<2x8x8xf32>
    %68 = vector.shape_cast %67 : vector<2x8x8xf32> to vector<16x8xf32>
    %69 = vector.extract_strided_slice %59 {offsets = [0, 3, 0, 0], sizes = [2, 1, 8, 8], strides = [1, 1, 1, 1]} : vector<2x4x8x8xf32> to vector<2x1x8x8xf32>
    %70 = vector.shape_cast %69 : vector<2x1x8x8xf32> to vector<2x8x8xf32>
    %71 = vector.shape_cast %70 : vector<2x8x8xf32> to vector<16x8xf32>
    %72 = tpu.concatenate %62, %65, %68, %71 in 1 : vector<16x8xf32>, vector<16x8xf32>, vector<16x8xf32>, vector<16x8xf32> -> vector<16x32xf32>
    %cst_7 = arith.constant dense<0.000000e+00> : vector<16x32xf32>
    %73 = tpu.matmul %72, %2, %cst_7 {dimension_numbers = #tpu.dot_dimension_numbers<[1], [0], [0], [1], [0, 0, 1, 1], [], []>} : vector<16x32xf32>, vector<32x32xf32>, vector<16x32xf32> -> vector<16x32xf32>
    %74 = vector.broadcast %6 : vector<1x32xf32> to vector<16x32xf32>
    %75 = arith.addf %73, %74 : vector<16x32xf32>
    %76 = arith.addf %75, %0 : vector<16x32xf32>
    %cst_8 = arith.constant dense<0.000000e+00> : vector<16x64xf32>
    %77 = tpu.matmul %76, %3, %cst_8 {dimension_numbers = #tpu.dot_dimension_numbers<[1], [0], [0], [1], [0, 0, 1, 1], [], []>} : vector<16x32xf32>, vector<32x64xf32>, vector<16x64xf32> -> vector<16x64xf32>
    %78 = vector.broadcast %7 : vector<1x64xf32> to vector<16x64xf32>
    %79 = arith.addf %77, %78 : vector<16x64xf32>
    %cst_9 = arith.constant 0.000000e+00 : f32
    %80 = vector.broadcast %cst_9 : f32 to vector<16x64xf32>
    %81 = arith.maximumf %79, %80 : vector<16x64xf32>
    %cst_10 = arith.constant dense<0.000000e+00> : vector<16x32xf32>
    %82 = tpu.matmul %81, %4, %cst_10 {dimension_numbers = #tpu.dot_dimension_numbers<[1], [0], [0], [1], [0, 0, 1, 1], [], []>} : vector<16x64xf32>, vector<64x32xf32>, vector<16x32xf32> -> vector<16x32xf32>
    %83 = vector.broadcast %8 : vector<1x32xf32> to vector<16x32xf32>
    %84 = arith.addf %82, %83 : vector<16x32xf32>
    %85 = arith.addf %84, %76 : vector<16x32xf32>
    %cst_11 = arith.constant 0.000000e+00 : f32
    %86 = vector.broadcast %cst_11 : f32 to vector<16x96xf32>
    %87 = tpu.concatenate %85, %86 in 1 : vector<16x32xf32>, vector<16x96xf32> -> vector<16x128xf32>
    %c0_12 = arith.constant 0 : index
    %c0_13 = arith.constant 0 : index
    %88 = vector.load %arg3[%c0_12, %c0_13] : memref<16x128xf32, #tpu.memory_space<vmem>>, vector<16x128xf32>
    tpu.vector_store %arg3[%c0_12, %c0_13], %87 {strides = array<i32>} : memref<16x128xf32, #tpu.memory_space<vmem>>, vector<16x128xf32>,
    return
  }
  func.func @transform_0(%arg0: i32) -> (i32, i32) {
    %c0_i32 = arith.constant 0 : i32
    %c0_i32_0 = arith.constant 0 : i32
    %c0_i32_1 = arith.constant 0 : i32
    return %c0_i32, %c0_i32_0 : i32, i32
  }
  func.func @transform_1(%arg0: i32) -> (i32, i32) {
    %c0_i32 = arith.constant 0 : i32
    %c0_i32_0 = arith.constant 0 : i32
    %c0_i32_1 = arith.constant 0 : i32
    return %c0_i32, %c0_i32_0 : i32, i32
  }
  func.func @transform_2(%arg0: i32) -> (i32, i32) {
    %c0_i32 = arith.constant 0 : i32
    %c0_i32_0 = arith.constant 0 : i32
    %c0_i32_1 = arith.constant 0 : i32
    return %c0_i32, %c0_i32_0 : i32, i32
  }
}

</mosaic_0001>

<bundles_post_ra>
// kernel: tpu_custom_call.1
= control target key start
LH: loop header
LB: loop body
LE: loop exit
PB: predicated region body
PF: predicated region fallthrough
CT: control target
= control target key end

     0   :  { %7 = vsyncpa [#allocation3], 0  ;;  %s1232_s0 = inlined_call_operand.hbm [shape: f32[16,32], index: 0, kind: input, shape index: {}]   ;;  %s1233_s1 = inlined_call_operand.hbm [shape: f32[88,128], index: 1, kind: input, shape index: {}]   ;;  %s1234_s2 = inlined_call_operand.hbm [shape: f32[16,128], index: 2, kind: output, shape index: {}]  }
   0x1   :  { %8 = vsyncpa [#allocation6], 0 }
   0x2   :  { %9 = vsyncpa [#allocation4], 0  ;;  %s14_s11 = sshll.u32 %s1232_s0, 4  ;;  %s1016_s12 = smov [#allocation2]   ;;  %s15_s11 = int_to_ptr.hbm [resolvable:$true] %s14_s11 }
   0x3   :  { %s16_s13 = sshll.u32 %s1016_s12, 4  ;;  %s27_s16 = sshll.u32 %s1233_s1, 4  ;;  %s17_s13 = int_to_ptr.vmem [resolvable:$true] %s16_s13  ;;  %s28_s16 = int_to_ptr.hbm [resolvable:$true] %s27_s16 }
   0x4   :  { %s1017_s17 = smov 128   ;;  %s1018_s18 = smov 8  }
   0x5   :  { %22 = dma.hbm_to_vmem [thread:$0]  %s15_s11, 256, %s17_s13, [#allocation3], %s1017_s17, %s1017_s17, %s1018_s18  }
   0x6   :  { %s1019_s19 = smov [#allocation5]  }
   0x7   :  { %s29_s20 = sshll.u32 %s1019_s19, 4  ;;  %s30_s20 = int_to_ptr.vmem [resolvable:$true] %s29_s20 }
   0x8   :  { %35 = dma.hbm_to_vmem [thread:$0]  %s28_s16, 1408, %s30_s20, [#allocation6], %s1017_s17, %s1017_s17, %s1018_s18  }
   0x9   :  { %1010 = dma.done.wait [#allocation3], 256  }
   0xa   :  { %1011 = vsyncadd [#allocation3], 4294967040 }
   0xb   :  { %1012 = dma.done.wait [#allocation6], 1408  }
   0xc   :  { %1013 = vsyncadd [#allocation6], 4294965888  ;;  %v1056_v0 = vld [vmem:[#allocation5 + $0x38] sm:$0xff]  ;;  %v1058_v1 = vld [vmem:[#allocation5 + $0x30] sm:$0xff]  ;;  %vm57_vm0 = vcmask 261120   ;;  %s1020_s0 = smov 104  }
   0xd   :  { %76 = vmatpush.msra.mxu0 %v1056_v0  ;;  %v886_v2 = vpack.i.bf16 %v1058_v1, %v1056_v0  ;;  %v1063_v3 = vld [vmem:[#allocation5 + $0x28] sm:$0xff]  ;;  %v1065_v4 = vld [vmem:[#allocation5 + $0x20] sm:$0xff]  ;;  %v1071_v6 = vld [vmem:[#allocation2] sm:$0xff]  ;;  %s1021_s1 = smov 120   ;;  %s1022_s21 = smov 112   ;;  %vm103_vm1 = vcmask 64512  }
   0xe   :  { %v891_v5 = vpack.i.bf16 %v1065_v4, %v1063_v3  ;;  %v1076_v7 = vld [vmem:[#allocation2 + $0x8] sm:$0xff]  ;;  %s1023_s22 = smov 96   ;;  %v55_v25 = vld [vmem:[#allocation5 + $0x48] sm:$0xff]  ;;  %v56_v34 = vld [vmem:[#allocation5 + $0x50] sm:$0xff]  ;;  %s1024_s23 = smov 64   ;;  %vm640_vm2 = vcmask 130048  }
   0xf   :  { %77 = vmatpush.msra.mxu0 %v1058_v1  ;;  %s1025_s24 = smov 24   ;;  %s1026_s25 = smov 16   ;;  %vm643_vm3 = vcmask 195584   ;;  %vm760_vm4 = vcmask 523264  }
  0x10   :  { %s1027_s26 = smov 32   ;;  %s1028_s27 = smov [#allocation7]  }
  0x11   :  { %78 = vmatpush.msra.mxu0 %v1063_v3  ;;  %s800_s28 = sshll.u32 %s1028_s27, 4  ;;  %s802_s3 = sshll.u32 %s1234_s2, 4  ;;  %s801_s28 = int_to_ptr.vmem [resolvable:$true] %s800_s28  ;;  %s803_s3 = int_to_ptr.hbm [resolvable:$true] %s802_s3 }
  0x13   :  { %79 = vmatpush.msra.mxu0 %v1065_v4 }
  0x14   :  { %816 = vmatmul.msk.f32.vlgmr.msra.gmra.mxu0 %vm57_vm0, %v1071_v6 }
  0x1c   :  { %817 = vmatmul.msk.f32.gmra.mxu0 %vm57_vm0, %v1076_v7 }
  0x91   :  { %v1080_v8 = vpop.f32.mrf.mxu0 }
  0x92   :  { %97 = vrot.lane.b32.xlu1 %v1080_v8, %s1020_s0  ;;  %89 = vrot.lane.b32.xlu0 %v1080_v8, %s1021_s1 }
  0x99   :  { %v1084_v9 = vpop.f32.mrf.mxu0 }
  0x9a   :  { %93 = vrot.lane.b32.xlu0 %v1080_v8, %s1022_s21  ;;  %99 = vrot.lane.b32.xlu1 %v1084_v9, %s1020_s0 }
  0x9b   :  { %91 = vrot.lane.b32.xlu2 %v1084_v9, %s1021_s1 }
  0xa2   :  { %101 = vrot.lane.b32.xlu0 %v1080_v8, %s1023_s22 }
  0xa3   :  { %95 = vrot.lane.b32.xlu2 %v1084_v9, %s1022_s21 }
  0xab   :  { %206 = vrot.lane.b32.xlu2 %v1084_v9, %s1023_s22 }
  0xf5   :  { %v1100_v12 = vpop.permute.xlu2 %91 }
  0xfd   :  { %v1112_v16 = vpop.permute.xlu2 %95 }
 0x104   :  { %v1094_v10 = vpop.permute.xlu1 %97  ;;  %v1096_v11 = vpop.permute.xlu0 %89 }
 0x105   :  { %128 = vrot.lane.b32.xlu1 %v1096_v11, %s1023_s22  ;;  %v207_v17 = vpop.permute.xlu2 %206 }
 0x10c   :  { %v1102_v13 = vpop.permute.xlu0 %93  ;;  %v1104_v14 = vpop.permute.xlu1 %99 }
 0x10d   :  { %154 = vrot.lane.b32.xlu0 %v1102_v13, %s1023_s22  ;;  %180 = vrot.lane.b32.xlu1 %v1094_v10, %s1023_s22  ;;  %v866_v50 = vpack.i.bf16 %v1104_v14, %v1102_v13 }
 0x10e   :  { %284 = vrot.lane.b32.xlu2 %v1104_v14, %s1023_s22 }
 0x114   :  { %v102_v15 = vpop.permute.xlu0 %101 }
 0x115   :  { %818 = vmatpush.xpose.msk.msra.mxu2 %vm103_vm1, %v102_v15  ;;  %232 = vrot.lane.b32.xlu0 %v1100_v12, %s1023_s22 }
 0x116   :  { %258 = vrot.lane.b32.xlu1 %v1112_v16, %s1023_s22 }
 0x118   :  { %819 = vmatmul.msk.f32.vlgmr.msra.gmra.mxu2 %vm103_vm1, %v1080_v8 }
 0x168   :  { %v285_v19 = vpop.permute.xlu2 %284 }
 0x177   :  { %v129_v18 = vpop.permute.xlu1 %128 }
 0x178   :  { %820 = vmatpush.xpose.msk.msrb.mxu2 %vm103_vm1, %v129_v18 }
 0x17b   :  { %821 = vmatmul.msk.f32.vlgmr.msrb.gmra.mxu2 %vm103_vm1, %v1096_v11 }
 0x17c   :  { %826 = vmatpush.xpose.msk.msra.mxu2 %vm103_vm1, %v207_v17 }
 0x17f   :  { %v155_v20 = vpop.permute.xlu0 %154  ;;  %v181_v21 = vpop.permute.xlu1 %180 }
 0x180   :  { %832 = vmatpush.xpose.msk.msrb.mxu2 %vm103_vm1, %v285_v19  ;;  %822 = vmatpush.xpose.msk.msra.mxu3 %vm103_vm1, %v155_v20 }
 0x181   :  { %824 = vmatpush.xpose.msk.msra.mxu1 %vm103_vm1, %v181_v21 }
 0x183   :  { %823 = vmatmul.msk.f32.vlgmr.msra.gmra.mxu3 %vm103_vm1, %v1102_v13  ;;  %827 = vmatmul.msk.f32.vlgmr.msra.gmra.mxu2 %vm103_vm1, %v1084_v9 }
 0x184   :  { %825 = vmatmul.msk.f32.vlgmr.msra.gmra.mxu1 %vm103_vm1, %v1094_v10 }
 0x187   :  { %v233_v22 = vpop.permute.xlu0 %232 }
 0x188   :  { %v259_v23 = vpop.permute.xlu1 %258  ;;  %828 = vmatpush.xpose.msk.msrb.mxu3 %vm103_vm1, %v233_v22 }
 0x189   :  { %830 = vmatpush.xpose.msk.msrb.mxu1 %vm103_vm1, %v259_v23 }
 0x18b   :  { %829 = vmatmul.msk.f32.vlgmr.msrb.gmra.mxu3 %vm103_vm1, %v1100_v12  ;;  %833 = vmatmul.msk.f32.vlgmr.msrb.gmra.mxu2 %vm103_vm1, %v1104_v14 }
 0x18c   :  { %831 = vmatmul.msk.f32.vlgmr.msrb.gmra.mxu1 %vm103_vm1, %v1112_v16 }
 0x19b   :  { %v125_v24 = vpop.f32.mrf.mxu2 }
 0x19c   :  { %v1146_v39 = vadd.f32 %v125_v24, %v55_v25 }
 0x19e   :  { %v318_v43 = vsel %vm103_vm1, %v1146_v39, -inf }
 0x1fe   :  { %v151_v26 = vpop.f32.mrf.mxu2 }
 0x1ff   :  { %v311_v27 = vadd.f32 %v151_v26, %v55_v25 }
 0x201   :  { %v203_v28 = vpop.f32.mrf.mxu1  ;;  %v321_v30 = vsel %vm103_vm1, %v311_v27, -inf }
 0x202   :  { %v313_v29 = vadd.f32 %v203_v28, %v55_v25  ;;  %322 = vmax.xlane.f32.xlu0 %v321_v30  ;;  %v861_v30 = vpack.i.bf16 %v1096_v11, %v1094_v10  ;;  %v871_v10 = vpack.i.bf16 %v1112_v16, %v1100_v12 }
 0x204   :  { %v327_v31 = vsel %vm103_vm1, %v313_v29, -inf }
 0x205   :  { %328 = vmax.xlane.f32.xlu2 %v327_v31 }
 0x206   :  { %v177_v32 = vpop.f32.mrf.mxu3  ;;  %v229_v42 = vpop.f32.mrf.mxu2 }
 0x207   :  { %v312_v33 = vadd.f32 %v177_v32, %v55_v25  ;;  %v1151_v45 = vadd.f32 %v229_v42, %v56_v34 }
 0x209   :  { %v281_v35 = vpop.f32.mrf.mxu1  ;;  %v324_v36 = vsel %vm103_vm1, %v312_v33, -inf  ;;  %v330_v46 = vsel %vm103_vm1, %v1151_v45, -inf }
 0x20a   :  { %v316_v37 = vadd.f32 %v281_v35, %v56_v34  ;;  %325 = vmax.xlane.f32.xlu1 %v324_v36 }
 0x20c   :  { %v336_v38 = vsel %vm103_vm1, %v316_v37, -inf }
 0x20d   :  { %337 = vmax.xlane.f32.xlu0 %v336_v38 }
 0x20e   :  { %v255_v40 = vpop.f32.mrf.mxu3  ;;  %v307_v47 = vpop.f32.mrf.mxu2 }
 0x20f   :  { %v315_v41 = vadd.f32 %v255_v40, %v56_v34  ;;  %v317_v48 = vadd.f32 %v307_v47, %v56_v34 }
 0x211   :  { %v333_v44 = vsel %vm103_vm1, %v315_v41, -inf  ;;  %v339_v49 = vsel %vm103_vm1, %v317_v48, -inf }
 0x212   :  { %319 = vmax.xlane.f32.xlu1 %v318_v43  ;;  %334 = vmax.xlane.f32.xlu2 %v333_v44 }
 0x21a   :  { %331 = vmax.xlane.f32.xlu2 %v330_v46 }
 0x222   :  { %340 = vmax.xlane.f32.xlu2 %v339_v49 }
 0x23a   :  { %867 = vrot.lane.b32.xlu2 %v866_v50, %s1024_s23 }
 0x275   :  { %v323_v51 = vpop.xlane.xlu0 %322 }
 0x276   :  { %v343_v52 = vsub.f32 %v311_v27, %v323_v51 }
 0x278   :  { %v329_v53 = vpop.xlane.xlu2 %328  ;;  %v352_v54 = vmul.f32 1.442695, %v343_v52 }
 0x279   :  { %v345_v55 = vsub.f32 %v313_v29, %v329_v53 }
 0x27a   :  { %906 = vpow2.f32 %v352_v54 }
 0x27b   :  { %v356_v56 = vmul.f32 1.442695, %v345_v55 }
 0x27d   :  { %908 = vpow2.f32 %v356_v56  ;;  %v326_v57 = vpop.xlane.xlu1 %325 }
 0x27e   :  { %v344_v58 = vsub.f32 %v312_v33, %v326_v57 }
 0x280   :  { %v1159_v59 = vpop.eup %906  ;;  %v354_v60 = vmul.f32 1.442695, %v344_v58  ;;  %v338_v61 = vpop.xlane.xlu0 %337 }
 0x281   :  { %v348_v62 = vsub.f32 %v316_v37, %v338_v61  ;;  %v369_v63 = vsel %vm103_vm1, %v1159_v59, 0.0 }
 0x282   :  { %910 = vpow2.f32 %v354_v60  ;;  %370 = vadd.xlane.f32.xlu1 %v369_v63 }
 0x283   :  { %v1163_v13 = vpop.eup %908  ;;  %v362_v14 = vmul.f32 1.442695, %v348_v62 }
 0x284   :  { %v375_v15 = vsel %vm103_vm1, %v1163_v13, 0.0 }
 0x285   :  { %376 = vadd.xlane.f32.xlu0 %v375_v15  ;;  %912 = vpow2.f32 %v362_v14  ;;  %v335_v17 = vpop.xlane.xlu2 %334  ;;  %v320_v35 = vpop.xlane.xlu1 %319 }
 0x286   :  { %v347_v18 = vsub.f32 %v315_v41, %v335_v17  ;;  %v342_v36 = vsub.f32 %v1146_v39, %v320_v35 }
 0x288   :  { %v911_v19 = vpop.eup %910  ;;  %v360_v20 = vmul.f32 1.442695, %v347_v18  ;;  %v350_v11 = vmul.f32 1.442695, %v342_v36 }
 0x289   :  { %v372_v21 = vsel %vm103_vm1, %v911_v19, 0.0 }
 0x28a   :  { %914 = vpow2.f32 %v360_v20  ;;  %373 = vadd.xlane.f32.xlu2 %v372_v21 }
 0x28b   :  { %v1168_v22 = vpop.eup %912 }
 0x28c   :  { %v384_v23 = vsel %vm103_vm1, %v1168_v22, 0.0 }
 0x28d   :  { %385 = vadd.xlane.f32.xlu0 %v384_v23  ;;  %v332_v24 = vpop.xlane.xlu2 %331 }
 0x28e   :  { %v346_v40 = vsub.f32 %v1151_v45, %v332_v24 }
 0x290   :  { %v1172_v25 = vpop.eup %914 }
 0x291   :  { %v381_v26 = vsel %vm103_vm1, %v1172_v25, 0.0 }
 0x292   :  { %382 = vadd.xlane.f32.xlu2 %v381_v26 }
 0x295   :  { %v341_v27 = vpop.xlane.xlu2 %340 }
 0x296   :  { %v349_v28 = vsub.f32 %v317_v48, %v341_v27 }
 0x298   :  { %v364_v29 = vmul.f32 1.442695, %v349_v28  ;;  %v49_v28 = vld [vmem:[#allocation5 + $0x18] sm:$0xff] }
 0x29a   :  { %916 = vpow2.f32 %v364_v29  ;;  %v48_v29 = vld [vmem:[#allocation5 + $0x10] sm:$0xff] }
 0x29b   :  { %862 = vrot.lane.b32.xlu1 %v861_v30, %s1024_s23  ;;  %918 = vpow2.f32 %v350_v11  ;;  %v47_v30 = vld [vmem:[#allocation5 + $0x8] sm:$0xff] }
 0x29d   :  { %v868_v31 = vpop.permute.xlu2 %867 }
 0x29e   :  { %v869_v32 = vunpack.i.l.bf16 %v868_v31  ;;  %v870_v54 = vunpack.i.h.bf16 %v868_v31  ;;  %v46_v31 = vld [vmem:[#allocation5] sm:$0xff] }
 0x2a0   :  { %v917_v33 = vpop.eup %916  ;;  %479 = vmatpush.msra.mxu1 %v869_v32  ;;  %v881_v32 = vpack.i.bf16 %v46_v31, %v47_v30 }
 0x2a1   :  { %v387_v34 = vsel %vm103_vm1, %v917_v33, 0.0  ;;  %v919_v37 = vpop.eup %918 }
 0x2a2   :  { %388 = vadd.xlane.f32.xlu0 %v387_v34  ;;  %v366_v38 = vsel %vm103_vm1, %v919_v37, 0.0  ;;  %v876_v34 = vpack.i.bf16 %v48_v29, %v49_v28 }
 0x2aa   :  { %406 = vrot.lane.b32.xlu2 %v1080_v8, %s1024_s23  ;;  %v358_v8 = vmul.f32 1.442695, %v346_v40 }
 0x2ac   :  { %920 = vpow2.f32 %v358_v8 }
 0x2b2   :  { %510 = vrot.lane.b32.xlu2 %v1084_v9, %s1024_s23  ;;  %v921_v41 = vpop.eup %920 }
 0x2b3   :  { %v378_v9 = vsel %vm103_vm1, %v921_v41, 0.0 }
 0x2b6   :  { %872 = vrot.lane.b32.xlu0 %v871_v10, %s1024_s23 }
 0x2c5   :  { %367 = vadd.xlane.f32.xlu1 %v366_v38 }
 0x2e0   :  { %379 = vadd.xlane.f32.xlu0 %v378_v9 }
 0x2f5   :  { %v371_v42 = vpop.xlane.xlu1 %370 }
 0x2f8   :  { %v377_v12 = vpop.xlane.xlu0 %376 }
 0x2fd   :  { %v374_v39 = vpop.xlane.xlu2 %373 }
 0x2fe   :  { %922 = vrcp.f32 %v374_v39 }
 0x2ff   :  { %924 = vrcp.f32 %v371_v42 }
 0x300   :  { %926 = vrcp.f32 %v377_v12  ;;  %v386_v45 = vpop.xlane.xlu0 %385 }
 0x304   :  { %v923_v16 = vpop.eup %922 }
 0x305   :  { %v400_v43 = vmul.f32 %v923_v16, %v911_v19  ;;  %v383_v44 = vpop.xlane.xlu2 %382  ;;  %v925_v46 = vpop.eup %924  ;;  %v54_v16 = vld [vmem:[#allocation5 + $0x40] sm:$0xff] }
 0x306   :  { %v927_v47 = vpop.eup %926  ;;  %v399_v53 = vmul.f32 %v925_v46, %v1159_v59 }
 0x307   :  { %836 = vmatmul.msk.f32.vlgmr.msra.gmra.mxu1 %vm103_vm1, %v400_v43  ;;  %v401_v52 = vmul.f32 %v927_v47, %v1163_v13  ;;  %v646_v43 = vperm.slane %v54_v16, 0 }
 0x30d   :  { %v407_v48 = vpop.permute.xlu2 %406  ;;  %v863_v49 = vpop.permute.xlu1 %862 }
 0x30e   :  { %v864_v50 = vunpack.i.l.bf16 %v863_v49  ;;  %427 = vmatpush.msra.mxu3 %v407_v48  ;;  %v865_v51 = vunpack.i.h.bf16 %v863_v49 }
 0x310   :  { %453 = vmatpush.msrb.mxu0 %v865_v51  ;;  %505 = vmatpush.msra.mxu2 %v864_v50 }
 0x311   :  { %835 = vmatmul.msk.f32.vlgmr.msrb.gmra.mxu0 %vm103_vm1, %v399_v53  ;;  %837 = vmatmul.msk.f32.vlgmr.msra.gmra.mxu2 %vm103_vm1, %v401_v52 }
 0x312   :  { %609 = vmatpush.msrb.mxu2 %v870_v54 }
 0x315   :  { %v389_v55 = vpop.xlane.xlu0 %388  ;;  %v511_v56 = vpop.permute.xlu2 %510 }
 0x316   :  { %928 = vrcp.f32 %v389_v55  ;;  %531 = vmatpush.msrb.mxu3 %v511_v56 }
 0x317   :  { %930 = vrcp.f32 %v386_v45 }
 0x318   :  { %932 = vrcp.f32 %v383_v44 }
 0x31c   :  { %v929_v57 = vpop.eup %928 }
 0x31d   :  { %v405_v58 = vmul.f32 %v929_v57, %v917_v33  ;;  %v931_v60 = vpop.eup %930 }
 0x31e   :  { %v933_v59 = vpop.eup %932  ;;  %v404_v13 = vmul.f32 %v931_v60, %v1168_v22 }
 0x31f   :  { %841 = vmatmul.msk.f32.vlgmr.msrb.gmra.mxu2 %vm103_vm1, %v405_v58  ;;  %v403_v14 = vmul.f32 %v933_v59, %v1172_v25 }
 0x328   :  { %v873_v61 = vpop.permute.xlu0 %872 }
 0x329   :  { %v875_v62 = vunpack.i.h.bf16 %v873_v61  ;;  %v874_v63 = vunpack.i.l.bf16 %v873_v61 }
 0x32b   :  { %557 = vmatpush.msra.mxu0 %v874_v63  ;;  %583 = vmatpush.msrb.mxu1 %v875_v62 }
 0x32c   :  { %839 = vmatmul.msk.f32.vlgmr.msra.gmra.mxu0 %vm103_vm1, %v403_v14  ;;  %840 = vmatmul.msk.f32.vlgmr.msrb.gmra.mxu1 %vm103_vm1, %v404_v13 }
 0x338   :  { %v368_v15 = vpop.xlane.xlu1 %367 }
 0x339   :  { %934 = vrcp.f32 %v368_v15 }
 0x33f   :  { %v935_v17 = vpop.eup %934 }
 0x340   :  { %v398_v18 = vmul.f32 %v935_v17, %v919_v37 }
 0x342   :  { %834 = vmatmul.msk.f32.vlgmr.msra.gmra.mxu3 %vm103_vm1, %v398_v18 }
 0x343   :  { %665 = vmatpush.msra.mxu3 %v49_v28 }
 0x345   :  { %666 = vmatpush.msra.mxu3 %v48_v29 }
 0x347   :  { %667 = vmatpush.msra.mxu3 %v47_v30 }
 0x349   :  { %668 = vmatpush.msra.mxu3 %v46_v31 }
 0x353   :  { %v380_v19 = vpop.xlane.xlu0 %379 }
 0x354   :  { %936 = vrcp.f32 %v380_v19 }
 0x35a   :  { %v937_v20 = vpop.eup %936 }
 0x35b   :  { %v402_v21 = vmul.f32 %v937_v20, %v921_v41 }
 0x35d   :  { %838 = vmatmul.msk.f32.vlgmr.msrb.gmra.mxu3 %vm103_vm1, %v402_v21 }
 0x384   :  { %v481_v24 = vpop.f32.mrf.mxu1 }
 0x38e   :  { %v455_v22 = vpop.f32.mrf.mxu0 }
 0x38f   :  { %616 = vrot.lane.b32.xlu2 %v455_v22, %s1018_s18 }
 0x394   :  { %v507_v23 = vpop.f32.mrf.mxu2 }
 0x395   :  { %632 = vrot.lane.b32.xlu1 %v507_v23, %s1025_s24 }
 0x397   :  { %624 = vrot.lane.b32.xlu2 %v481_v24, %s1026_s25 }
 0x39d   :  { %882 = vrot.lane.b32.xlu1 %v881_v32, %s1023_s22 }
 0x3a2   :  { %v611_v27 = vpop.f32.mrf.mxu2 }
 0x3a5   :  { %897 = vrot.lane.b32.xlu1 %v876_v34, %s1027_s26 }
 0x3a9   :  { %v559_v25 = vpop.f32.mrf.mxu0  ;;  %v585_v26 = vpop.f32.mrf.mxu1 }
 0x3aa   :  { %626 = vrot.lane.b32.xlu0 %v585_v26, %s1026_s25  ;;  %618 = vrot.lane.b32.xlu2 %v559_v25, %s1018_s18 }
 0x3ad   :  { %757 = vrot.lane.b32.xlu1 %v646_v43, %s1027_s26 }
 0x3b2   :  { %634 = vrot.lane.b32.xlu2 %v611_v27, %s1025_s24  ;;  %892 = vrot.lane.b32.xlu0 %v891_v5, %s1027_s26 }
 0x3ba   :  { %877 = vrot.lane.b32.xlu2 %v876_v34, %s1023_s22  ;;  %902 = vrot.lane.b32.xlu0 %v881_v32, %s1027_s26 }
 0x3c2   :  { %887 = vrot.lane.b32.xlu2 %v886_v2, %s1027_s26 }
 0x3c5   :  { %v429_v36 = vpop.f32.mrf.mxu3 }
 0x3ca   :  { %695 = vrot.lane.b32.xlu2 %v646_v43, %s1023_s22 }
 0x3e0   :  { %v533_v8 = vpop.f32.mrf.mxu3 }
 0x3e9   :  { %v617_v33 = vpop.permute.xlu2 %616 }
 0x3ea   :  { %v638_v10 = vsel %vm103_vm1, %v429_v36, %v617_v33 }
 0x3f1   :  { %v625_v35 = vpop.permute.xlu2 %624 }
 0x3f2   :  { %v641_v11 = vsel %vm640_vm2, %v638_v10, %v625_v35 }
 0x404   :  { %v619_v40 = vpop.permute.xlu2 %618 }
 0x405   :  { %v639_v41 = vsel %vm103_vm1, %v533_v8, %v619_v40 }
 0x407   :  { %v633_v37 = vpop.permute.xlu1 %632 }
 0x408   :  { %v644_v38 = vsel %vm643_vm3, %v641_v11, %v633_v37 }
 0x409   :  { %842 = vmatmul.msk.f32.vlgmr.msra.gmra.mxu3 %vm57_vm0, %v644_v38 }
 0x40c   :  { %v635_v39 = vpop.permute.xlu2 %634 }
 0x40f   :  { %v883_v0 = vpop.permute.xlu1 %882 }
 0x410   :  { %v885_v1 = vunpack.i.h.bf16 %v883_v0  ;;  %v884_v2 = vunpack.i.l.bf16 %v883_v0 }
 0x414   :  { %v878_v3 = vpop.permute.xlu2 %877 }
 0x415   :  { %v880_v4 = vunpack.i.h.bf16 %v878_v3  ;;  %v879_v5 = vunpack.i.l.bf16 %v878_v3 }
 0x417   :  { %716 = vmatpush.msrb.mxu0 %v879_v5  ;;  %v898_v56 = vpop.permute.xlu1 %897 }
 0x418   :  { %v900_v58 = vunpack.i.h.bf16 %v898_v56  ;;  %v899_v60 = vunpack.i.l.bf16 %v898_v56 }
 0x419   :  { %717 = vmatpush.msrb.mxu0 %v880_v4 }
 0x41b   :  { %718 = vmatpush.msrb.mxu0 %v884_v2 }
 0x41c   :  { %v627_v9 = vpop.permute.xlu0 %626  ;;  %v888_v44 = vpop.permute.xlu2 %887 }
 0x41d   :  { %v642_v42 = vsel %vm640_vm2, %v639_v41, %v627_v9  ;;  %719 = vmatpush.msrb.mxu0 %v885_v1  ;;  %v890_v47 = vunpack.i.h.bf16 %v888_v44  ;;  %v889_v45 = vunpack.i.l.bf16 %v888_v44 }
 0x41e   :  { %v645_v12 = vsel %vm643_vm3, %v642_v42, %v635_v39 }
 0x41f   :  { %843 = vmatmul.msk.f32.gmra.mxu3 %vm57_vm0, %v645_v12  ;;  %775 = vmatpush.msra.mxu1 %v889_v45  ;;  %v758_v17 = vpop.permute.xlu1 %757 }
 0x421   :  { %776 = vmatpush.msra.mxu1 %v890_v47 }
 0x424   :  { %v893_v46 = vpop.permute.xlu0 %892 }
 0x425   :  { %v894_v48 = vunpack.i.l.bf16 %v893_v46  ;;  %v895_v50 = vunpack.i.h.bf16 %v893_v46 }
 0x427   :  { %777 = vmatpush.msra.mxu1 %v894_v48 }
 0x429   :  { %778 = vmatpush.msra.mxu1 %v895_v50 }
 0x42b   :  { %779 = vmatpush.msra.mxu1 %v899_v60 }
 0x42c   :  { %v903_v57 = vpop.permute.xlu0 %902 }
 0x42d   :  { %v904_v59 = vunpack.i.l.bf16 %v903_v57  ;;  %v905_v61 = vunpack.i.h.bf16 %v903_v57  ;;  %780 = vmatpush.msra.mxu1 %v900_v58 }
 0x42f   :  { %781 = vmatpush.msra.mxu1 %v904_v59 }
 0x431   :  { %782 = vmatpush.msra.mxu1 %v905_v61 }
 0x48c   :  { %v670_v49 = vpop.f32.mrf.mxu3 }
 0x48d   :  { %v671_v51 = vadd.f32 %v670_v49, %v646_v43 }
 0x48f   :  { %v676_v52 = vadd.f32 %v671_v51, %v1071_v6  ;;  %v696_v6 = vpop.permute.xlu2 %695 }
 0x491   :  { %844 = vmatmul.msk.f32.vlgmr.msrb.gmra.mxu0 %vm57_vm0, %v676_v52 }
 0x4a2   :  { %v673_v53 = vpop.f32.mrf.mxu3 }
 0x4a3   :  { %v674_v54 = vadd.f32 %v673_v53, %v646_v43 }
 0x4a5   :  { %v677_v55 = vadd.f32 %v674_v54, %v1076_v7 }
 0x4a7   :  { %845 = vmatmul.msk.f32.gmra.mxu0 %vm57_vm0, %v677_v55 }
 0x50e   :  { %v721_v62 = vpop.f32.mrf.mxu0 }
 0x50f   :  { %v722_v63 = vadd.f32 %v721_v62, %v696_v6 }
 0x511   :  { %v727_v13 = vmax.f32 %v722_v63, 0.0 }
 0x513   :  { %846 = vmatmul.msk.f32.vlgmr.msra.gmra.mxu1 %vm760_vm4, %v727_v13 }
 0x524   :  { %v724_v14 = vpop.f32.mrf.mxu0 }
 0x525   :  { %v725_v7 = vadd.f32 %v724_v14, %v696_v6 }
 0x527   :  { %v728_v15 = vmax.f32 %v725_v7, 0.0 }
 0x529   :  { %847 = vmatmul.msk.f32.gmra.mxu1 %vm760_vm4, %v728_v15 }
 0x590   :  { %v784_v18 = vpop.f32.mrf.mxu1 }
 0x591   :  { %v785_v19 = vadd.f32 %v784_v18, %v758_v17 }
 0x593   :  { %v790_v20 = vadd.f32 %v785_v19, %v676_v52 }
 0x595   :  { %v792_v21 = vsel %vm57_vm0, %v790_v20, 0.0 }
 0x596   :  { %794 = vst [vmem:[#allocation7] sm:$0xff] %v792_v21 }
 0x5a6   :  { %v787_v22 = vpop.f32.mrf.mxu1 }
 0x5a7   :  { %v788_v23 = vadd.f32 %v787_v22, %v758_v17 }
 0x5a9   :  { %v791_v24 = vadd.f32 %v788_v23, %v677_v55 }
 0x5ab   :  { %v793_v25 = vsel %vm57_vm0, %v791_v24, 0.0 }
 0x5ac   :  { %795 = vst [vmem:[#allocation7 + $0x8] sm:$0xff] %v793_v25 }
 0x5ad   :  { %808 = dma.vmem_to_hbm [thread:$0]  %s801_s28, 256, %s803_s3, [#allocation4], %s1017_s17, %s1017_s17, %s1018_s18  }
 0x5ae   :  { %1014 = dma.done.wait [#allocation4], 256  }
 0x5af   :  { %1015 = vsyncadd [#allocation4], 4294967040 }
 0x5b0   :  { %813 = vsyncpa [#allocation3], 1 }
 0x5b1   :  { %814 = vsyncpa [#allocation6], 1 }
 0x5b2   :  { %815 = vsyncpa [#allocation4], 1 }

</bundles_post_ra>
